<compile_context>
chip_gen: v7x
topology: tpu7x:2x2x1
jax: 0.10.0
libtpu: 0.0.40
codegen_flags: <defaults>
</compile_context>

<pallas_src>
import functools

import jax
import jax.numpy as jnp
from jax import lax
from jax.experimental import pallas as pl
from jax.experimental.pallas import tpu as pltpu


# ----------------------------- Pallas kernel ------------------------------

def _addnorm_kernel(x_ref, y_ref, g_ref, b_ref, o_ref, *, eps):
    # x_ref, y_ref, o_ref: (TM, D); g_ref, b_ref: (1, D) f32
    x = x_ref[...].astype(jnp.float32)
    y = y_ref[...].astype(jnp.float32)
    z = y + x                                        # dropout(Y) + X  (dropout = identity)
    # One-pass moments: both lane reductions (XLU) are independent of each other,
    # so they overlap with the VPU normalize chain below.
    mean = jnp.mean(z, axis=-1, keepdims=True)
    mean_sq = jnp.mean(z * z, axis=-1, keepdims=True)
    var = jnp.maximum(mean_sq - mean * mean, 0.0)    # guard tiny negative fp error
    inv = lax.rsqrt(var + eps)                       # EUP
    out = (z - mean) * inv * g_ref[...] + b_ref[...]
    o_ref[...] = out.astype(o_ref.dtype)


# --------------------------- Tiling / VMEM budget ---------------------------

def _vmem_budget_bytes():
    """Scoped-VMEM budget for this call, derived from the actual chip.

    ~3/4 of physical VMEM, capped at 96 MiB:
      v7x (64 MiB physical)  -> ~48 MiB
      v6e/v5e (128 MiB)      -> 96 MiB
    Falls back to a v7x-safe 40 MiB if the query is unavailable.
    """
    phys = None
    try:
        info = pltpu.get_tpu_info()
        phys = int(getattr(info, "vmem_capacity_bytes", 0)) or None
    except Exception:
        phys = None
    if phys is None:
        return 40 << 20
    return min(phys * 3 // 4, 96 << 20)


def _sublane_multiple(itemsize):
    # Sub-32-bit dtypes pack along sublanes: f32 -> 8, bf16 -> 16, int8/fp8 -> 32.
    return {4: 8, 2: 16, 1: 32}.get(int(itemsize), 8)


def _pick_row_tile(n_rows, feat_dim, itemsize, vmem_budget, min_steps=8):
    """Largest row tile whose double-buffered I/O + f32 working set fits the budget,
    clamped so the grid has >= min_steps steps whenever there is enough work
    (keeps the pipeline running and gives both v7x TensorCores rows)."""
    sublane = _sublane_multiple(itemsize)
    # Per row: 2 bufs x (2 inputs + 1 output) in native dtype + ~4 f32 rows of
    # in-kernel working set (z, moments, normalized output before downcast).
    per_row = 6 * feat_dim * itemsize + 4 * feat_dim * 4
    tm = max(sublane, vmem_budget // max(1, per_row))
    tm = (tm // sublane) * sublane

    if n_rows >= min_steps * sublane:
        cap = -(-n_rows // min_steps)                # cdiv(N, min_steps)
        cap = -(-cap // sublane) * sublane           # round up to sublane multiple
        tm = min(tm, cap)

    if tm >= n_rows:
        return n_rows                                # single full block is always legal
    return max(sublane, tm)


# ------------------------------ pallas_call --------------------------------

def pallas_add_norm(x2d, y2d, gamma, beta, eps=1e-5):
    """x2d, y2d: (N, D) -> LayerNorm_D(y2d + x2d) * gamma + beta.

    HBM I/O stays in x2d.dtype (pass bf16 for bandwidth-bound deployments);
    all reduction / normalization math is f32 in-register.
    """
    N, D = x2d.shape
    assert y2d.shape == (N, D)
    assert x2d.dtype == y2d.dtype, "X and Y must share a dtype (native I/O dtype)"

    vmem_budget = _vmem_budget_bytes()
    TM = _pick_row_tile(N, D, jnp.dtype(x2d.dtype).itemsize, vmem_budget)
    grid = (pl.cdiv(N, TM),)

    kernel = functools.partial(_addnorm_kernel, eps=eps)
    return pl.pallas_call(
        kernel,
        out_shape=jax.ShapeDtypeStruct((N, D), x2d.dtype),
        grid=grid,
        in_specs=[
            pl.BlockSpec((TM, D), lambda i: (i, 0)),   # X rows   (pipelined)
            pl.BlockSpec((TM, D), lambda i: (i, 0)),   # Y rows   (pipelined)
            pl.BlockSpec((1, D), lambda i: (0, 0)),    # gamma    (resident)
            pl.BlockSpec((1, D), lambda i: (0, 0)),    # beta     (resident)
        ],
        out_specs=pl.BlockSpec((TM, D), lambda i: (i, 0)),
        compiler_params=pltpu.CompilerParams(
            dimension_semantics=("parallel",),
            vmem_limit_bytes=int(vmem_budget),
        ),
    )(x2d, y2d, gamma.reshape(1, D).astype(jnp.float32),
      beta.reshape(1, D).astype(jnp.float32))


# --------------------------- Module-like wrapper ---------------------------

class AddNormPallas:
    """Pallas equivalent of:  forward(X, Y) = LayerNorm(dropout(Y) + X)."""

    def __init__(self, normalized_shape, dropout=0.0, eps=1e-5):
        if isinstance(normalized_shape, int):
            normalized_shape = (normalized_shape,)
        self.normalized_shape = tuple(int(s) for s in normalized_shape)
        self.dropout_p = float(dropout)
        self.eps = float(eps)
        feat = 1
        for s in self.normalized_shape:
            feat *= s
        self.feat = feat
        # PyTorch LayerNorm defaults: weight = 1, bias = 0 (elementwise_affine=True)
        self.gamma = jnp.ones((feat,), jnp.float32)
        self.beta = jnp.zeros((feat,), jnp.float32)

    def __call__(self, X, Y):
        assert X.shape == Y.shape, "AddNorm requires X and Y with identical shapes"
        nd = len(self.normalized_shape)
        assert tuple(X.shape[-nd:]) == self.normalized_shape, \
            "trailing dims must match normalized_shape"
        orig_shape = X.shape
        x2d = X.reshape(-1, self.feat)
        y2d = Y.reshape(-1, self.feat)
        out = pallas_add_norm(x2d, y2d, self.gamma, self.beta, self.eps)
        return out.reshape(orig_shape)


# ------------------------------- Reference --------------------------------

def _add_norm_ref(x, y, gamma, beta, eps):
    z = (y.astype(jnp.float32) + x.astype(jnp.float32))
    mean = jnp.mean(z, axis=-1, keepdims=True)
    var = jnp.mean((z - mean) ** 2, axis=-1, keepdims=True)
    return (z - mean) / jnp.sqrt(var + eps) * gamma + beta


# --------------------------------- Demo ------------------------------------

if __name__ == "__main__":
    B, S, D = 2, 8, 32          # small shapes; normalized_shape = D = 32
    key = jax.random.PRNGKey(0)
    kx, ky = jax.random.split(key)
    X = jax.random.normal(kx, (B, S, D), jnp.float32)
    Y = jax.random.normal(ky, (B, S, D), jnp.float32)

    addnorm = AddNormPallas(normalized_shape=D, dropout=0.0)

    # f32 I/O path
    out = addnorm(X, Y)
    jax.block_until_ready(out)
    ref = _add_norm_ref(X, Y, addnorm.gamma, addnorm.beta, addnorm.eps)
    assert out.shape == (B, S, D)
    assert jnp.all(jnp.isfinite(out))
    assert jnp.allclose(out, ref, rtol=1e-4, atol=1e-4), "f32 mismatch vs reference"

    # bf16 I/O path (native narrow dtype end-to-end; f32 math in-register)
    out_bf16 = addnorm(X.astype(jnp.bfloat16), Y.astype(jnp.bfloat16))
    jax.block_until_ready(out_bf16)
    assert out_bf16.dtype == jnp.bfloat16
    assert jnp.all(jnp.isfinite(out_bf16.astype(jnp.float32)))
    assert jnp.allclose(out_bf16.astype(jnp.float32), ref, rtol=5e-2, atol=5e-2), \
        "bf16 mismatch vs reference"

    print("KERNEL_OK")
</pallas_src>

<mosaic_0001>
module attributes {stable_mosaic.version = 11 : i64} {
  func.func @_addnorm_kernel(%arg0: i32, %arg1: memref<16x32xf32, #tpu.memory_space<vmem>>, %arg2: memref<16x32xf32, #tpu.memory_space<vmem>>, %arg3: memref<1x32xf32, #tpu.memory_space<vmem>>, %arg4: memref<1x32xf32, #tpu.memory_space<vmem>>, %arg5: memref<16x32xf32, #tpu.memory_space<vmem>>) attributes {dimension_semantics = [#tpu.dimension_semantics<parallel>], iteration_bounds = array<i64: 1>, scalar_prefetch = 0 : i64, scratch_operands = 0 : i64, tpu.core_type = #tpu.core_type<tc>, window_params = [{transform_indices = @transform_0, window_bounds = array<i64: 16, 32>}, {transform_indices = @transform_1, window_bounds = array<i64: 16, 32>}, {pipeline_mode = #tpu.pipeline_mode<synchronous>, transform_indices = @transform_2, window_bounds = array<i64: 1, 32>}, {pipeline_mode = #tpu.pipeline_mode<synchronous>, transform_indices = @transform_3, window_bounds = array<i64: 1, 32>}, {transform_indices = @transform_4, window_bounds = array<i64: 16, 32>}]} {
    %c0 = arith.constant 0 : index
    %c0_0 = arith.constant 0 : index
    %0 = vector.load %arg1[%c0, %c0_0] : memref<16x32xf32, #tpu.memory_space<vmem>>, vector<16x32xf32>
    %c0_1 = arith.constant 0 : index
    %c0_2 = arith.constant 0 : index
    %1 = vector.load %arg2[%c0_1, %c0_2] : memref<16x32xf32, #tpu.memory_space<vmem>>, vector<16x32xf32>
    %2 = arith.addf %1, %0 : vector<16x32xf32>
    %cst = arith.constant dense<0.000000e+00> : vector<16xf32>
    %3 = vector.multi_reduction <add>, %2, %cst [1] : vector<16x32xf32> to vector<16xf32>
    %4 = vector.shape_cast %3 : vector<16xf32> to vector<16x1xf32>
    %cst_3 = arith.constant 3.200000e+01 : f32
    %5 = vector.broadcast %cst_3 : f32 to vector<16x1xf32>
    %6 = arith.divf %4, %5 : vector<16x1xf32>
    %7 = arith.mulf %2, %2 : vector<16x32xf32>
    %cst_4 = arith.constant dense<0.000000e+00> : vector<16xf32>
    %8 = vector.multi_reduction <add>, %7, %cst_4 [1] : vector<16x32xf32> to vector<16xf32>
    %9 = vector.shape_cast %8 : vector<16xf32> to vector<16x1xf32>
    %cst_5 = arith.constant 3.200000e+01 : f32
    %10 = vector.broadcast %cst_5 : f32 to vector<16x1xf32>
    %11 = arith.divf %9, %10 : vector<16x1xf32>
    %12 = arith.mulf %6, %6 : vector<16x1xf32>
    %13 = arith.subf %11, %12 : vector<16x1xf32>
    %cst_6 = arith.constant 0.000000e+00 : f32
    %14 = vector.broadcast %cst_6 : f32 to vector<16x1xf32>
    %15 = arith.maximumf %13, %14 : vector<16x1xf32>
    %cst_7 = arith.constant 9.99999974E-6 : f32
    %16 = vector.broadcast %cst_7 : f32 to vector<16x1xf32>
    %17 = arith.addf %15, %16 : vector<16x1xf32>
    %18 = math.rsqrt %17 : vector<16x1xf32>
    %19 = vector.broadcast %6 : vector<16x1xf32> to vector<16x32xf32>
    %20 = arith.subf %2, %19 : vector<16x32xf32>
    %21 = vector.broadcast %18 : vector<16x1xf32> to vector<16x32xf32>
    %22 = arith.mulf %20, %21 : vector<16x32xf32>
    %c0_8 = arith.constant 0 : index
    %c0_9 = arith.constant 0 : index
    %23 = vector.load %arg3[%c0_8, %c0_9] : memref<1x32xf32, #tpu.memory_space<vmem>>, vector<1x32xf32>
    %24 = vector.broadcast %23 : vector<1x32xf32> to vector<16x32xf32>
    %25 = arith.mulf %22, %24 : vector<16x32xf32>
    %c0_10 = arith.constant 0 : index
    %c0_11 = arith.constant 0 : index
    %26 = vector.load %arg4[%c0_10, %c0_11] : memref<1x32xf32, #tpu.memory_space<vmem>>, vector<1x32xf32>
    %27 = vector.broadcast %26 : vector<1x32xf32> to vector<16x32xf32>
    %28 = arith.addf %25, %27 : vector<16x32xf32>
    %c0_12 = arith.constant 0 : index
    %c0_13 = arith.constant 0 : index
    %29 = vector.load %arg5[%c0_12, %c0_13] : memref<16x32xf32, #tpu.memory_space<vmem>>, vector<16x32xf32>
    tpu.vector_store %arg5[%c0_12, %c0_13], %28 {strides = array<i32>} : memref<16x32xf32, #tpu.memory_space<vmem>>, vector<16x32xf32>,
    return
  }
  func.func @transform_0(%arg0: i32) -> (i32, i32) {
    %c0_i32 = arith.constant 0 : i32
    %c0_i32_0 = arith.constant 0 : i32
    return %arg0, %c0_i32 : i32, i32
  }
  func.func @transform_1(%arg0: i32) -> (i32, i32) {
    %c0_i32 = arith.constant 0 : i32
    %c0_i32_0 = arith.constant 0 : i32
    return %arg0, %c0_i32 : i32, i32
  }
  func.func @transform_2(%arg0: i32) -> (i32, i32) {
    %c0_i32 = arith.constant 0 : i32
    %c0_i32_0 = arith.constant 0 : i32
    %c0_i32_1 = arith.constant 0 : i32
    return %c0_i32, %c0_i32_0 : i32, i32
  }
  func.func @transform_3(%arg0: i32) -> (i32, i32) {
    %c0_i32 = arith.constant 0 : i32
    %c0_i32_0 = arith.constant 0 : i32
    %c0_i32_1 = arith.constant 0 : i32
    return %c0_i32, %c0_i32_0 : i32, i32
  }
  func.func @transform_4(%arg0: i32) -> (i32, i32) {
    %c0_i32 = arith.constant 0 : i32
    %c0_i32_0 = arith.constant 0 : i32
    return %arg0, %c0_i32 : i32, i32
  }
}

</mosaic_0001>

<bundles_post_ra>
// kernel: tpu_custom_call.1
= control target key start
LH: loop header
LB: loop body
LE: loop exit
PB: predicated region body
PF: predicated region fallthrough
CT: control target
= control target key end

     0   :  { %9 = vsyncpa [#allocation3], 0  ;;  %s294_s0 = inlined_call_operand.hbm [shape: f32[16,32], index: 0, kind: input, shape index: {}]   ;;  %s295_s1 = inlined_call_operand.hbm [shape: f32[16,32], index: 1, kind: input, shape index: {}]   ;;  %s296_s2 = inlined_call_operand.vmem [shape: f32[1,32], index: 2, kind: input, shape index: {}]   ;;  %s297_s3 = inlined_call_operand.vmem [shape: f32[1,32], index: 3, kind: input, shape index: {}]   ;;  %s298_s4 = inlined_call_operand.hbm [shape: f32[16,32], index: 4, kind: output, shape index: {}]  }
   0x1   :  { %10 = vsyncpa [#allocation6], 0 }
   0x2   :  { %11 = vsyncpa [#allocation4], 0  ;;  %s207_s15 = smov [#allocation2]   ;;  %s135_s19 = scalar_lea.hbm %s294_s0, 256 }
   0x3   :  { %s17_s16 = sshll.u32 %s207_s15, 4  ;;  %p136_p0 = scmp.ne.s32.totalorder %s294_s0, %s135_s19  ;;  %s18_s16 = int_to_ptr.vmem [resolvable:$true] %s17_s16 }
   0x4   :  { %p139_p1 = scmp.lt.u32.totalorder %s135_s19, %s294_s0 }
   0x6   :  { %p141_p2 = pnand %p139_p1, %p136_p0 }
   0x8   :  { %144 = shalt.err (!%p141_p2)
}
   0x9   :  { %s145_s24 = scalar_lea.vmem %s18_s16, 256  ;;  %p150_p4 = scmp.lt.s32.totalorder %s18_s16, %s18_s16 }
   0xa   :  { %p146_p3 = scmp.ne.s32.totalorder %s18_s16, %s145_s24  ;;  %p151_p5 = scmp.lt.s32.totalorder %s145_s24, %s145_s24 }
   0xc   :  { %p152_p6 = por %p151_p5, %p150_p4 }
   0xe   :  { %p153_p7 = pnand %p152_p6, %p146_p3 }
  0x10   :  { %156 = shalt.err (!%p153_p7)
}
  0x11   :  { %s208_s25 = smov 128   ;;  %s209_s26 = smov 8  }
  0x12   :  { %23 = dma.hbm_to_vmem [thread:$0]  %s294_s0, 256, %s18_s16, [#allocation3], %s208_s25, %s208_s25, %s209_s26  }
  0x13   :  { %s210_s29 = smov [#allocation5]   ;;  %s157_s7 = scalar_lea.hbm %s295_s1, 256 }
  0x14   :  { %s29_s30 = sshll.u32 %s210_s29, 4  ;;  %p158_p8 = scmp.ne.s32.totalorder %s295_s1, %s157_s7  ;;  %s30_s30 = int_to_ptr.vmem [resolvable:$true] %s29_s30 }
  0x15   :  { %p161_p9 = scmp.lt.u32.totalorder %s157_s7, %s295_s1 }
  0x17   :  { %p163_p10 = pnand %p161_p9, %p158_p8 }
  0x19   :  { %166 = shalt.err (!%p163_p10)
}
  0x1a   :  { %s167_s12 = scalar_lea.vmem %s30_s30, 256  ;;  %p172_p12 = scmp.lt.s32.totalorder %s30_s30, %s30_s30 }
  0x1b   :  { %p168_p11 = scmp.ne.s32.totalorder %s30_s30, %s167_s12  ;;  %p173_p13 = scmp.lt.s32.totalorder %s167_s12, %s167_s12 }
  0x1d   :  { %p174_p0 = por %p173_p13, %p172_p12 }
  0x1f   :  { %p175_p1 = pnand %p174_p0, %p168_p11 }
  0x21   :  { %178 = shalt.err (!%p175_p1)
}
  0x22   :  { %35 = dma.hbm_to_vmem [thread:$0]  %s295_s1, 256, %s30_s30, [#allocation6], %s208_s25, %s208_s25, %s209_s26  }
  0x23   :  { %201 = dma.done.wait [#allocation3], 256  }
  0x24   :  { %202 = vsyncadd [#allocation3], 4294967040 }
  0x25   :  { %203 = dma.done.wait [#allocation6], 256  }
  0x26   :  { %204 = vsyncadd [#allocation6], 4294967040  ;;  %v46_v0 = vld [vmem:[#allocation2] sm:$0xff]  ;;  %v48_v1 = vld [vmem:[#allocation5] sm:$0xff]  ;;  %vm52_vm0 = vcmask 261120   ;;  %s211_s17 = smov [#allocation7]  }
  0x27   :  { %v47_v2 = vld [vmem:[#allocation2 + $0x8] sm:$0xff]  ;;  %v50_v3 = vadd.f32 %v48_v1, %v46_v0  ;;  %v49_v4 = vld [vmem:[#allocation5 + $0x8] sm:$0xff]  ;;  %v124_v30 = vld [vmem:[%s296_s2] ss:$0 sm:$0xff]  ;;  %s111_s18 = sshll.u32 %s211_s17, 4  ;;  %s112_s18 = int_to_ptr.vmem [resolvable:$true] %s111_s18 }
  0x28   :  { %v51_v5 = vadd.f32 %v49_v4, %v47_v2  ;;  %v125_v32 = vld [vmem:[%s297_s3] ss:$0 sm:$0xff]  ;;  %s179_s2 = scalar_lea.vmem %s112_s18, 256  ;;  %p184_p3 = scmp.lt.s32.totalorder %s112_s18, %s112_s18 }
  0x29   :  { %v53_v6 = vsel %vm52_vm0, %v50_v3, 0.0  ;;  %v62_v7 = vmul.f32 %v50_v3, %v50_v3  ;;  %p180_p2 = scmp.ne.s32.totalorder %s112_s18, %s179_s2  ;;  %p185_p4 = scmp.lt.s32.totalorder %s179_s2, %s179_s2 }
  0x2a   :  { %54 = vadd.xlane.f32.xlu0 %v53_v6  ;;  %v63_v8 = vmul.f32 %v51_v5, %v51_v5  ;;  %v56_v10 = vsel %vm52_vm0, %v51_v5, 0.0 }
  0x2b   :  { %v64_v9 = vsel %vm52_vm0, %v62_v7, 0.0  ;;  %p186_p5 = por %p185_p4, %p184_p3 }
  0x2c   :  { %65 = vadd.xlane.f32.xlu1 %v64_v9  ;;  %v67_v11 = vsel %vm52_vm0, %v63_v8, 0.0 }
  0x2d   :  { %p187_p6 = pnand %p186_p5, %p180_p2 }
  0x2e   :  { %57 = vadd.xlane.f32.xlu0 %v56_v10 }
  0x30   :  { %68 = vadd.xlane.f32.xlu1 %v67_v11 }
  0xb7   :  { %v55_v12 = vpop.xlane.xlu0 %54 }
  0xb8   :  { %v60_v13 = vmul.f32 0.03125, %v55_v12 }
  0xb9   :  { %v66_v14 = vpop.xlane.xlu1 %65 }
  0xba   :  { %v72_v15 = vmul.f32 %v60_v13, %v60_v13  ;;  %v70_v16 = vmul.f32 0.03125, %v66_v14  ;;  %v82_v28 = vsub.f32 %v50_v3, %v60_v13 }
  0xbb   :  { %v58_v17 = vpop.xlane.xlu0 %57 }
  0xbc   :  { %v74_v18 = vsub.f32 %v70_v16, %v72_v15  ;;  %v61_v19 = vmul.f32 0.03125, %v58_v17 }
  0xbd   :  { %v69_v20 = vpop.xlane.xlu1 %68 }
  0xbe   :  { %v76_v21 = vmax.f32 %v74_v18, 0.0  ;;  %v73_v22 = vmul.f32 %v61_v19, %v61_v19  ;;  %v71_v23 = vmul.f32 0.03125, %v69_v20  ;;  %v83_v33 = vsub.f32 %v51_v5, %v61_v19 }
  0xc0   :  { %v78_v24 = vadd.f32 1e-05, %v76_v21  ;;  %v75_v25 = vsub.f32 %v71_v23, %v73_v22 }
  0xc2   :  { %131 = vrsqrt.f32 %v78_v24  ;;  %v77_v26 = vmax.f32 %v75_v25, 0.0 }
  0xc4   :  { %v79_v27 = vadd.f32 1e-05, %v77_v26 }
  0xc6   :  { %133 = vrsqrt.f32 %v79_v27 }
  0xcc   :  { %v132_v29 = vpop.eup %131 }
  0xcd   :  { %v84_v31 = vmul.f32 %v132_v29, %v82_v28 }
  0xcf   :  { %v93_v34 = vmul.f32 %v124_v30, %v84_v31 }
  0xd0   :  { %v134_v35 = vpop.eup %133 }
  0xd1   :  { %v85_v36 = vmul.f32 %v134_v35, %v83_v33  ;;  %v102_v37 = vadd.f32 %v125_v32, %v93_v34 }
  0xd3   :  { %v94_v38 = vmul.f32 %v124_v30, %v85_v36  ;;  %104 = vst.msk [vmem:[#allocation7] sm:$0xff] %vm52_vm0, %v102_v37 }
  0xd5   :  { %v103_v39 = vadd.f32 %v125_v32, %v94_v38 }
  0xd7   :  { %105 = vst.msk [vmem:[#allocation7 + $0x8] sm:$0xff] %vm52_vm0, %v103_v39 }
  0xd8   :  { %190 = shalt.err (!%p187_p6)
}
  0xd9   :  { %s191_s20 = scalar_lea.hbm %s298_s4, 256 }
  0xda   :  { %p192_p7 = scmp.ne.s32.totalorder %s298_s4, %s191_s20  ;;  %p195_p8 = scmp.lt.u32.totalorder %s191_s20, %s298_s4 }
  0xdc   :  { %p197_p9 = pnand %p195_p8, %p192_p7 }
  0xde   :  { %200 = shalt.err (!%p197_p9)
}
  0xdf   :  { %117 = dma.vmem_to_hbm [thread:$0]  %s112_s18, 256, %s298_s4, [#allocation4], %s208_s25, %s208_s25, %s209_s26  }
  0xe0   :  { %205 = dma.done.wait [#allocation4], 256  }
  0xe1   :  { %206 = vsyncadd [#allocation4], 4294967040 }
  0xe2   :  { %121 = vsyncpa [#allocation3], 1 }
  0xe3   :  { %122 = vsyncpa [#allocation6], 1 }
  0xe4   :  { %123 = vsyncpa [#allocation4], 1 }

</bundles_post_ra>
